<compile_context>
chip_gen: v7x
topology: tpu7x:2x2x1
jax: 0.10.0
libtpu: 0.0.40
codegen_flags: <defaults>
</compile_context>

<pallas_src>
import functools

import jax
import jax.numpy as jnp
from jax.experimental import pallas as pl
from jax.experimental.pallas import tpu as pltpu


def _round_up(n, m):
    return ((n + m - 1) // m) * m


def _gelu_exact(x):
    # nn.GELU() default ('none') = exact erf-based GELU.
    return 0.5 * x * (1.0 + jax.lax.erf(x * 0.7071067811865476))


# ----------------------------------------------------------------------------
# Kernel: K-tiled  x @ W1  accumulation, then bias + GELU + (h @ W2 + b2)
# ----------------------------------------------------------------------------
def _embed_fc_kernel(x_ref, w1_ref, b1_ref, w2_ref, b2_ref, out_ref, acc_ref):
    k = pl.program_id(1)

    @pl.when(k == 0)
    def _():
        acc_ref[...] = jnp.zeros_like(acc_ref)

    # (tm, tk) @ (tk, E) on the MXU, bf16 inputs, f32 accumulation.
    acc_ref[...] += jnp.dot(
        x_ref[...].astype(jnp.bfloat16),
        w1_ref[...],
        preferred_element_type=jnp.float32,
    )

    @pl.when(k == pl.num_programs(1) - 1)
    def _():
        h = _gelu_exact(acc_ref[...] + b1_ref[...])              # (tm, E) f32
        out_ref[...] = (
            jnp.dot(h.astype(jnp.bfloat16), w2_ref[...],
                    preferred_element_type=jnp.float32)
            + b2_ref[...]
        ).astype(out_ref.dtype)


# ----------------------------------------------------------------------------
# Wrapper
# ----------------------------------------------------------------------------
def embed_fc_forward(x, w1, b1, w2, b2, *, tm=None, tk=None):
    """EmbedFC.forward: x.view(-1, input_dim) -> Linear -> GELU -> Linear."""
    input_dim, emb_dim = w1.shape
    x2 = x.reshape(-1, input_dim).astype(jnp.float32)
    M = x2.shape[0]

    # --- tile sizes -----------------------------------------------------
    if tm is None:
        tm = min(128, _round_up(M, 8))            # fill the MXU M dim
    Mp = _round_up(M, tm)
    if tk is None:
        tk = min(512, _round_up(input_dim, 128))  # K tile (double-buffered)
    Kp = _round_up(input_dim, tk)

    # --- pad / cast operands (zero-padding contributes nothing) ---------
    x_p = jnp.zeros((Mp, Kp), jnp.float32).at[:M, :input_dim].set(x2)
    w1_p = (jnp.zeros((Kp, emb_dim), jnp.bfloat16)
            .at[:input_dim, :].set(w1.astype(jnp.bfloat16)))
    w2_b = w2.astype(jnp.bfloat16)
    b1_2 = b1.reshape(1, emb_dim).astype(jnp.float32)
    b2_2 = b2.reshape(1, emb_dim).astype(jnp.float32)

    grid = (Mp // tm, Kp // tk)

    out = pl.pallas_call(
        _embed_fc_kernel,
        out_shape=jax.ShapeDtypeStruct((Mp, emb_dim), jnp.float32),
        grid_spec=pltpu.PrefetchScalarGridSpec(
            num_scalar_prefetch=0,
            grid=grid,
            in_specs=[
                pl.BlockSpec((tm, tk), lambda i, k: (i, k)),          # x
                pl.BlockSpec((tk, emb_dim), lambda i, k: (k, 0)),     # W1 (streamed)
                pl.BlockSpec((1, emb_dim), lambda i, k: (0, 0)),      # b1
                pl.BlockSpec((emb_dim, emb_dim), lambda i, k: (0, 0)),# W2
                pl.BlockSpec((1, emb_dim), lambda i, k: (0, 0)),      # b2
            ],
            out_specs=pl.BlockSpec((tm, emb_dim), lambda i, k: (i, 0)),
            scratch_shapes=[pltpu.VMEM((tm, emb_dim), jnp.float32)],
        ),
        compiler_params=pltpu.CompilerParams(
            dimension_semantics=("parallel", "arbitrary")),
    )(x_p, w1_p, b1_2, w2_b, b2_2)

    return out[:M]


# ----------------------------------------------------------------------------
# Pure-JAX f32 reference (for numerical sanity check)
# ----------------------------------------------------------------------------
def _embed_fc_reference(x, w1, b1, w2, b2):
    input_dim = w1.shape[0]
    x2 = x.reshape(-1, input_dim)
    h = _gelu_exact(x2 @ w1 + b1)
    return h @ w2 + b2


# ----------------------------------------------------------------------------
# Demo
# ----------------------------------------------------------------------------
if __name__ == "__main__":
    B, C, Hs, Ws = 2, 4, 16, 16
    input_dim = Hs * Ws            # x.view(-1, 256): (B, C, 16, 16) -> (8, 256)
    emb_dim = 128                  # lane-friendly embedding width

    root = jax.random.PRNGKey(0)
    kx, k1, k2, k3, k4 = jax.random.split(root, 5)

    x = jax.random.normal(kx, (B, C, Hs, Ws), jnp.float32)
    # PyTorch Linear-style init: U(-1/sqrt(fan_in), 1/sqrt(fan_in)).
    lim1 = 1.0 / jnp.sqrt(input_dim)
    lim2 = 1.0 / jnp.sqrt(emb_dim)
    w1 = jax.random.uniform(k1, (input_dim, emb_dim), jnp.float32, -lim1, lim1)
    b1 = jax.random.uniform(k2, (emb_dim,), jnp.float32, -lim1, lim1)
    w2 = jax.random.uniform(k3, (emb_dim, emb_dim), jnp.float32, -lim2, lim2)
    b2 = jax.random.uniform(k4, (emb_dim,), jnp.float32, -lim2, lim2)

    # tk=128 so the demo exercises the K-accumulation path (grid = (1, 2)).
    fwd = jax.jit(functools.partial(embed_fc_forward, tm=8, tk=128))
    out = fwd(x, w1, b1, w2, b2)
    jax.block_until_ready(out)

    ref = _embed_fc_reference(x, w1, b1, w2, b2)
    assert out.shape == (B * C, emb_dim), out.shape
    assert bool(jnp.all(jnp.isfinite(out)))
    max_err = float(jnp.max(jnp.abs(out - ref)))
    assert jnp.allclose(out, ref, rtol=5e-2, atol=5e-2), max_err
    print("KERNEL_OK")
</pallas_src>

<mosaic_0001>
module attributes {stable_mosaic.version = 11 : i64} {
  func.func @_embed_fc_kernel(%arg0: i32, %arg1: i32, %arg2: memref<8x128xf32, #tpu.memory_space<vmem>>, %arg3: memref<128x128xbf16, #tpu.memory_space<vmem>>, %arg4: memref<1x128xf32, #tpu.memory_space<vmem>>, %arg5: memref<128x128xbf16, #tpu.memory_space<vmem>>, %arg6: memref<1x128xf32, #tpu.memory_space<vmem>>, %arg7: memref<8x128xf32, #tpu.memory_space<vmem>>, %arg8: memref<8x128xf32, #tpu.memory_space<vmem>>) attributes {dimension_semantics = [#tpu.dimension_semantics<parallel>, #tpu.dimension_semantics<arbitrary>], iteration_bounds = array<i64: 1, 2>, scalar_prefetch = 0 : i64, scratch_operands = 1 : i64, tpu.core_type = #tpu.core_type<tc>, window_params = [{transform_indices = @transform_0, window_bounds = array<i64: 8, 128>}, {transform_indices = @transform_1, window_bounds = array<i64: 128, 128>}, {pipeline_mode = #tpu.pipeline_mode<synchronous>, transform_indices = @transform_2, window_bounds = array<i64: 1, 128>}, {pipeline_mode = #tpu.pipeline_mode<synchronous>, transform_indices = @transform_3, window_bounds = array<i64: 128, 128>}, {pipeline_mode = #tpu.pipeline_mode<synchronous>, transform_indices = @transform_4, window_bounds = array<i64: 1, 128>}, {transform_indices = @transform_5, window_bounds = array<i64: 8, 128>}]} {
    %c0_i32 = arith.constant 0 : i32
    %0 = arith.cmpi eq, %arg1, %c0_i32 : i32
    %1 = arith.extui %0 : i1 to i32
    %c0_i32_0 = arith.constant 0 : i32
    %2 = arith.cmpi ne, %1, %c0_i32_0 : i32
    scf.if %2 {
      %cst_9 = arith.constant 0.000000e+00 : f32
      %13 = vector.broadcast %cst_9 : f32 to vector<8x128xf32>
      %c0_10 = arith.constant 0 : index
      %c0_11 = arith.constant 0 : index
      %14 = vector.load %arg8[%c0_10, %c0_11] : memref<8x128xf32, #tpu.memory_space<vmem>>, vector<8x128xf32>
      tpu.vector_store %arg8[%c0_10, %c0_11], %13 {strides = array<i32>} : memref<8x128xf32, #tpu.memory_space<vmem>>, vector<8x128xf32>,
    } else {
    }
    %c0 = arith.constant 0 : index
    %c0_1 = arith.constant 0 : index
    %3 = vector.load %arg8[%c0, %c0_1] : memref<8x128xf32, #tpu.memory_space<vmem>>, vector<8x128xf32>
    %c0_2 = arith.constant 0 : index
    %c0_3 = arith.constant 0 : index
    %4 = vector.load %arg2[%c0_2, %c0_3] : memref<8x128xf32, #tpu.memory_space<vmem>>, vector<8x128xf32>
    %5 = arith.truncf %4 : vector<8x128xf32> to vector<8x128xbf16>
    %c0_4 = arith.constant 0 : index
    %c0_5 = arith.constant 0 : index
    %6 = vector.load %arg3[%c0_4, %c0_5] : memref<128x128xbf16, #tpu.memory_space<vmem>>, vector<128x128xbf16>
    %cst = arith.constant dense<0.000000e+00> : vector<8x128xf32>
    %7 = tpu.matmul %5, %6, %cst {dimension_numbers = #tpu.dot_dimension_numbers<[1], [0], [0], [1], [0, 0, 1, 1], [], []>} : vector<8x128xbf16>, vector<128x128xbf16>, vector<8x128xf32> -> vector<8x128xf32>
    %8 = arith.addf %3, %7 : vector<8x128xf32>
    %c0_6 = arith.constant 0 : index
    %c0_7 = arith.constant 0 : index
    %9 = vector.load %arg8[%c0_6, %c0_7] : memref<8x128xf32, #tpu.memory_space<vmem>>, vector<8x128xf32>
    tpu.vector_store %arg8[%c0_6, %c0_7], %8 {strides = array<i32>} : memref<8x128xf32, #tpu.memory_space<vmem>>, vector<8x128xf32>,
    %c1_i32 = arith.constant 1 : i32
    %10 = arith.cmpi eq, %arg1, %c1_i32 : i32
    %11 = arith.extui %10 : i1 to i32
    %c0_i32_8 = arith.constant 0 : i32
    %12 = arith.cmpi ne, %11, %c0_i32_8 : i32
    scf.if %12 {
      %c0_9 = arith.constant 0 : index
      %c0_10 = arith.constant 0 : index
      %13 = vector.load %arg8[%c0_9, %c0_10] : memref<8x128xf32, #tpu.memory_space<vmem>>, vector<8x128xf32>
      %c0_11 = arith.constant 0 : index
      %c0_12 = arith.constant 0 : index
      %14 = vector.load %arg4[%c0_11, %c0_12] : memref<1x128xf32, #tpu.memory_space<vmem>>, vector<1x128xf32>
      %15 = vector.broadcast %14 : vector<1x128xf32> to vector<8x128xf32>
      %16 = arith.addf %13, %15 : vector<8x128xf32>
      %cst_13 = arith.constant 5.000000e-01 : f32
      %17 = vector.broadcast %cst_13 : f32 to vector<8x128xf32>
      %18 = arith.mulf %17, %16 : vector<8x128xf32>
      %cst_14 = arith.constant 0.707106769 : f32
      %19 = vector.broadcast %cst_14 : f32 to vector<8x128xf32>
      %20 = arith.mulf %16, %19 : vector<8x128xf32>
      %21 = math.erf %20 : vector<8x128xf32>
      %cst_15 = arith.constant 1.000000e+00 : f32
      %22 = vector.broadcast %cst_15 : f32 to vector<8x128xf32>
      %23 = arith.addf %22, %21 : vector<8x128xf32>
      %24 = arith.mulf %18, %23 : vector<8x128xf32>
      %25 = arith.truncf %24 : vector<8x128xf32> to vector<8x128xbf16>
      %c0_16 = arith.constant 0 : index
      %c0_17 = arith.constant 0 : index
      %26 = vector.load %arg5[%c0_16, %c0_17] : memref<128x128xbf16, #tpu.memory_space<vmem>>, vector<128x128xbf16>
      %cst_18 = arith.constant dense<0.000000e+00> : vector<8x128xf32>
      %27 = tpu.matmul %25, %26, %cst_18 {dimension_numbers = #tpu.dot_dimension_numbers<[1], [0], [0], [1], [0, 0, 1, 1], [], []>} : vector<8x128xbf16>, vector<128x128xbf16>, vector<8x128xf32> -> vector<8x128xf32>
      %c0_19 = arith.constant 0 : index
      %c0_20 = arith.constant 0 : index
      %28 = vector.load %arg6[%c0_19, %c0_20] : memref<1x128xf32, #tpu.memory_space<vmem>>, vector<1x128xf32>
      %29 = vector.broadcast %28 : vector<1x128xf32> to vector<8x128xf32>
      %30 = arith.addf %27, %29 : vector<8x128xf32>
      %c0_21 = arith.constant 0 : index
      %c0_22 = arith.constant 0 : index
      %31 = vector.load %arg7[%c0_21, %c0_22] : memref<8x128xf32, #tpu.memory_space<vmem>>, vector<8x128xf32>
      tpu.vector_store %arg7[%c0_21, %c0_22], %30 {strides = array<i32>} : memref<8x128xf32, #tpu.memory_space<vmem>>, vector<8x128xf32>,
    } else {
    }
    return
  }
  func.func @transform_0(%arg0: i32, %arg1: i32) -> (i32, i32) {
    %c0_i32 = arith.constant 0 : i32
    return %arg0, %arg1 : i32, i32
  }
  func.func @transform_1(%arg0: i32, %arg1: i32) -> (i32, i32) {
    %c0_i32 = arith.constant 0 : i32
    %c0_i32_0 = arith.constant 0 : i32
    return %arg1, %c0_i32 : i32, i32
  }
  func.func @transform_2(%arg0: i32, %arg1: i32) -> (i32, i32) {
    %c0_i32 = arith.constant 0 : i32
    %c0_i32_0 = arith.constant 0 : i32
    %c0_i32_1 = arith.constant 0 : i32
    return %c0_i32, %c0_i32_0 : i32, i32
  }
  func.func @transform_3(%arg0: i32, %arg1: i32) -> (i32, i32) {
    %c0_i32 = arith.constant 0 : i32
    %c0_i32_0 = arith.constant 0 : i32
    %c0_i32_1 = arith.constant 0 : i32
    return %c0_i32, %c0_i32_0 : i32, i32
  }
  func.func @transform_4(%arg0: i32, %arg1: i32) -> (i32, i32) {
    %c0_i32 = arith.constant 0 : i32
    %c0_i32_0 = arith.constant 0 : i32
    %c0_i32_1 = arith.constant 0 : i32
    return %c0_i32, %c0_i32_0 : i32, i32
  }
  func.func @transform_5(%arg0: i32, %arg1: i32) -> (i32, i32) {
    %c0_i32 = arith.constant 0 : i32
    %c0_i32_0 = arith.constant 0 : i32
    return %arg0, %c0_i32 : i32, i32
  }
}

</mosaic_0001>

<bundles_post_ra>
// kernel: embed_fc_forward.1
= control target key start
LH: loop header
LB: loop body
LE: loop exit
PB: predicated region body
PF: predicated region fallthrough
CT: control target
= control target key end

     0   :  { %10 = vsyncpa [#allocation4], 0  ;;  %s817_s18 = smov 0   ;;  %s819_s19 = smov 0   ;;  %s919_s0 = inlined_call_operand.vmem [shape: f32[8,256], index: 0, kind: input, shape index: {}]   ;;  %s920_s1 = inlined_call_operand.vmem [shape: bf16[256,128], index: 1, kind: input, shape index: {}]   ;;  %s921_s2 = inlined_call_operand.vmem [shape: f32[1,128], index: 2, kind: input, shape index: {}]   ;;  %s922_s3 = inlined_call_operand.vmem [shape: bf16[128,128], index: 3, kind: input, shape index: {}]   ;;  %s923_s4 = inlined_call_operand.vmem [shape: f32[1,128], index: 4, kind: input, shape index: {}]   ;;  %s924_s5 = inlined_call_operand.hbm [shape: f32[8,128], index: 5, kind: output, shape index: {}]  }
   0x1   :  { %s821_s20 = smov 0  }
   0x2 LB: > { %s584_s21 = sadd.s32 4294967295, %s779_s20   ;;  %s25_s22 = sadd.s32 1, %s775_s19  ;;  %s779_s20 = sphi %s821_s20, %s16_s20   ;;  %s775_s19 = sphi %s819_s19, %s927_s19   ;;  %s771_s18 = sphi %s817_s18, %s926_s18  }
   0x3   : > { %p26_p0 = scmp.ge.s32.totalorder %s25_s22, 2  ;;  %p587_p1 = scmp.ge.s32.totalorder %s779_s20, 1 }
   0x4   : > { %p216_p2 = scmp.lt.s32.totalorder %s779_s20, 3 }
   0x5   : > { %s929_s22 = smov (%p26_p0, %s25_s22), 0 }
   0x6   : > { %p217_p3 = pnand %p587_p1, %p216_p2 }
   0x7   : > { %p249_p4 = scmp.lt.s32.totalorder (!%p217_p3), %s771_s18, 1  ;;  %s589_s23 = sshll.u32 (!%p217_p3), %s771_s18, 4 }
   0x8   : > { %220 = sbr.rel (%p217_p3) target bundleno = 539 (0x21b), region = 40  ;;  %p256_p5 = scmp.lt.s32.totalorder (!%p217_p3), %s589_s23, 31 }
   0x9   : > { %p591_p6 = scmp.ne.s32.totalorder (!%p217_p3), %s771_s18, 0 }
   0xf   : > { %s250_s24 = scalar_select %p249_p4, %s771_s18, 1 }
  0x10   : > { %s931_s23 = smov (!%p256_p5, %s589_s23), 31  ;;  %265 = sbr.rel (%p591_p6) target bundleno = 23 (0x17), region = 44 }
  0x11   : > { %s588_s25 = sshll.u32 %s250_s24, 3  ;;  %s590_s29 = sshll.u32 %s931_s23, 2  ;;  %v781_v0 = vmov (!%p591_p6), 0.0  }
  0x12   : > { %s844_s28 = scalar_lea.vmem %s919_s0, %s588_s25  ;;  %s259_s7 = scalar_lea.vmem %s920_s1, %s590_s29  ;;  %266 = vst [vmem:[#allocation2] sm:$0xff] (!%p591_p6), %v781_v0 }
  0x17 PF: > { %v709_v1 = vld [vmem:[%s259_s7] sm:$0xff]   ;;  %v782_v2 = vmov 0.0   ;;  %v710_v3 = vld [vmem:[%s259_s7 + $0x8] sm:$0xff]   ;;  %vm783_vm0 = vmmov 0   ;;  %v711_v4 = vld [vmem:[%s259_s7 + $0x10] sm:$0xff]   ;;  %p600_p7 = scmp.ne.s32.totalorder %s771_s18, 1 }
  0x18   : > { %633 = vmatprep.subr.bf16.mxu0 %v782_v2  ;;  %649 = vmatprep.mubr.msk.bf16.mxu0 %vm783_vm0, %v782_v2  ;;  %v712_v5 = vld [vmem:[%s259_s7 + $0x18] sm:$0xff]   ;;  %v713_v6 = vld [vmem:[%s259_s7 + $0x20] sm:$0xff]   ;;  %v714_v7 = vld [vmem:[%s259_s7 + $0x28] sm:$0xff]   ;;  %v784_v19 = vmov (!%p600_p7), 0.0   ;;  %vm785_vm1 = vmmov (!%p600_p7), 0  }
  0x19   : > { %634 = vmatpush3.bf16.msra.mxu0 %v709_v1  ;;  %v715_v8 = vld [vmem:[%s259_s7 + $0x30] sm:$0xff]   ;;  %v716_v9 = vld [vmem:[%s259_s7 + $0x38] sm:$0xff]   ;;  %v268_v10 = vld [vmem:[%s844_s28] sm:$0xff] }
  0x1a   : > { %635 = vmatprep.subr.bf16.mxu0 %v782_v2  ;;  %v269_v11 = vpack.c.bf16 %v268_v10, %v268_v10  ;;  %v267_v12 = vld [vmem:[#allocation2] sm:$0xff]  ;;  %v718_v20 = vld [vmem:[%s922_s3 + $0x8] sm:$0xff] (!%p600_p7)   ;;  %v719_v21 = vld [vmem:[%s922_s3 + $0x10] sm:$0xff] (!%p600_p7)  }
  0x1b   : > { %v717_v18 = vld [vmem:[%s922_s3] sm:$0xff] (!%p600_p7)   ;;  %v720_v25 = vld [vmem:[%s922_s3 + $0x18] sm:$0xff] (!%p600_p7)   ;;  %v722_v28 = vld [vmem:[%s922_s3 + $0x28] sm:$0xff] (!%p600_p7)  }
  0x1c   : > { %v601_v23 = vld [vmem:[%s921_s2] ss:$0 sm:$0xff] (!%p600_p7)  ;;  %v723_v29 = vld [vmem:[%s922_s3 + $0x30] sm:$0xff] (!%p600_p7)   ;;  %v724_v33 = vld [vmem:[%s922_s3 + $0x38] sm:$0xff] (!%p600_p7)  }
  0x1d   : > { %636 = vmatpush3.bf16.msra.mxu0 %v710_v3  ;;  %v721_v27 = vld [vmem:[%s922_s3 + $0x20] sm:$0xff] (!%p600_p7)  }
  0x1e   : > { %637 = vmatprep.subr.bf16.mxu0 %v782_v2  ;;  %v602_v36 = vld [vmem:[%s923_s4] ss:$0 sm:$0xff] (!%p600_p7) }
  0x21   : > { %638 = vmatpush3.bf16.msra.mxu0 %v711_v4 }
  0x22   : > { %639 = vmatprep.subr.bf16.mxu0 %v782_v2 }
  0x25   : > { %640 = vmatpush3.bf16.msra.mxu0 %v712_v5 }
  0x26   : > { %641 = vmatprep.subr.bf16.mxu0 %v782_v2 }
  0x29   : > { %642 = vmatpush3.bf16.msra.mxu0 %v713_v6 }
  0x2a   : > { %643 = vmatprep.subr.bf16.mxu0 %v782_v2 }
  0x2d   : > { %644 = vmatpush3.bf16.msra.mxu0 %v714_v7 }
  0x2e   : > { %645 = vmatprep.subr.bf16.mxu0 %v782_v2 }
  0x31   : > { %646 = vmatpush3.bf16.msra.mxu0 %v715_v8 }
  0x32   : > { %647 = vmatprep.subr.bf16.mxu0 %v782_v2 }
  0x35   : > { %648 = vmatpush3.bf16.msra.mxu0 %v716_v9 }
  0x36   : > { %653 = vmatprep.subr.bf16.mxu0 (!%p600_p7), %v784_v19 }
  0x38   : > { %650 = vmatmul.mubr.bf16.vlgmr.msra.gmra.mrb[0].mxu0 %v269_v11 }
  0x39   : > { %654 = vmatpush3.bf16.msra.mxu0 (!%p600_p7), %v717_v18  ;;  %669 = vmatprep.mubr.msk.bf16.mxu0 (!%p600_p7), %vm785_vm1, %v784_v19 }
  0x3a   : > { %655 = vmatprep.subr.bf16.mxu0 (!%p600_p7), %v784_v19 }
  0x3d   : > { %656 = vmatpush3.bf16.msra.mxu0 (!%p600_p7), %v718_v20 }
  0x3e   : > { %657 = vmatprep.subr.bf16.mxu0 (!%p600_p7), %v784_v19 }
  0x41   : > { %658 = vmatpush3.bf16.msra.mxu0 (!%p600_p7), %v719_v21 }
  0x42   : > { %659 = vmatprep.subr.bf16.mxu0 (!%p600_p7), %v784_v19 }
  0x45   : > { %660 = vmatpush3.bf16.msra.mxu0 (!%p600_p7), %v720_v25 }
  0x46   : > { %661 = vmatprep.subr.bf16.mxu0 (!%p600_p7), %v784_v19 }
  0x49   : > { %662 = vmatpush3.bf16.msra.mxu0 (!%p600_p7), %v721_v27 }
  0x4a   : > { %663 = vmatprep.subr.bf16.mxu0 (!%p600_p7), %v784_v19 }
  0x4d   : > { %664 = vmatpush3.bf16.msra.mxu0 (!%p600_p7), %v722_v28 }
  0x4e   : > { %665 = vmatprep.subr.bf16.mxu0 (!%p600_p7), %v784_v19 }
  0x51   : > { %666 = vmatpush3.bf16.msra.mxu0 (!%p600_p7), %v723_v29 }
  0x52   : > { %667 = vmatprep.subr.bf16.mxu0 (!%p600_p7), %v784_v19 }
  0x55   : > { %668 = vmatpush3.bf16.msra.mxu0 (!%p600_p7), %v724_v33 }
 0x108   : > { %379 = sbr.rel (%p600_p7) target bundleno = 514 (0x202), region = 48 }
 0x10b   : > { %v368_v13 = vpop.f32.mrb[0].mxu0 }
 0x10c   : > { %v374_v14 = vadd.f32 %v368_v13, %v267_v12  ;;  %v651_v15 = vpop.f32.mrb[1].mxu0 }
 0x10d   : > { %v371_v16 = vpop.f32.mrb[2].mxu0 }
 0x10e   : > { %375 = vst [vmem:[#allocation2] sm:$0xff] %v374_v14  ;;  %v652_v17 = vpop.f32.mrb[3].mxu0 }
 0x115   : > { %v380_v22 = vld [vmem:[#allocation2] sm:$0xff] }
 0x116   : > { %v388_v24 = vadd.f32 %v601_v23, %v380_v22 }
 0x118   : > { %v390_v26 = vmul.f32 0.70710677, %v388_v24  ;;  %v389_v30 = vmul.f32 0.5, %v388_v24 }
 0x11a   : > { %725 = verf.f32 %v390_v26 }
 0x124   : > { %v726_v31 = vpop.eup %725 }
 0x125   : > { %v392_v32 = vadd.f32 1.0, %v726_v31 }
 0x127   : > { %v393_v34 = vmul.f32 %v392_v32, %v389_v30 }
 0x129   : > { %v394_v35 = vpack.c.bf16 %v393_v34, %v393_v34 }
 0x12b   : > { %670 = vmatmul.mubr.bf16.vlgmr.msra.gmra.mrb[0].mxu0 %v394_v35 }
 0x1fe   : > { %v500_v37 = vpop.f32.mrb[0].mxu0 }
 0x1ff   : > { %v501_v38 = vadd.f32 %v602_v36, %v500_v37  ;;  %v671_v39 = vpop.f32.mrb[1].mxu0 }
 0x200   : > { %v503_v40 = vpop.f32.mrb[2].mxu0 }
 0x201   : > { %506 = vst [vmem:[#allocation3] sm:$0xff] %v501_v38  ;;  %v672_v41 = vpop.f32.mrb[3].mxu0 }
 0x202 PF: > { %p884_p8 = scmp.eq.s32.totalorder %s584_s21, 1  ;;  %s786_s8 = smov [#allocation3]  }
 0x203   : > { %s516_s9 = sshll.u32 %s786_s8, 4  ;;  %s517_s9 = int_to_ptr.vmem [resolvable:$true] %s516_s9 }
 0x204   : > { %s727_s10 = scalar_lea.vmem %s517_s9, 128  ;;  %p734_p12 = scmp.lt.s32.totalorder %s517_s9, %s517_s9 }
 0x205   : > { %p728_p9 = scmp.ne.s32.totalorder %s517_s9, %s727_s10  ;;  %p735_p13 = scmp.lt.s32.totalorder %s727_s10, %s727_s10 }
 0x207   : > { %p729_p10 = pnand %p728_p9, %p884_p8  ;;  %p736_p0 = por %p735_p13, %p734_p12 }
 0x209   : > { %p730_p11 = pneg %p729_p10 }
 0x20b   : > { %p737_p1 = pnand %p736_p0, %p730_p11 }
 0x20d   : > { %740 = shalt.err (!%p737_p1)
}
 0x20e   : > { %s741_s21 = scalar_lea.hbm %s924_s5, 128 }
 0x20f   : > { %p742_p2 = scmp.ne.s32.totalorder %s924_s5, %s741_s21  ;;  %p747_p5 = scmp.lt.u32.totalorder %s741_s21, %s924_s5 }
 0x211   : > { %p743_p3 = pnand %p742_p2, %p884_p8 }
 0x213   : > { %p744_p4 = pneg %p743_p3 }
 0x215   : > { %p749_p6 = pnand %p747_p5, %p744_p4 }
 0x217   : > { %752 = shalt.err (!%p749_p6)
}
 0x218   : > { %674 = dma.vmem_to_hbm [thread:$0]  (%p884_p8), %s517_s9, 128, %s924_s5, [#allocation4]  }
 0x219   : > { %766 = dma.done.wait (%p884_p8), [#allocation4], 128  }
 0x21a   : > { %768 = vsyncadd (%p884_p8), [#allocation4], 4294967168 }
 0x21b PF: > { %s16_s20 = sadd.s32 1, %s779_s20   ;;  %s926_s18 = smov %s775_s19 }
 0x21c   : > { %p13_p7 = scmp.ge.s32.totalorder %s16_s20, 4   ;;  %s927_s19 = smov %s929_s22 }
 0x21e   :  { %15 = sbr.rel (!%p13_p7) target bundleno = 2 (0x2), region = 79 }
 0x225   :  { %529 = vsyncpa [#allocation4], 1 }
 0x226   :  { %531 = vsyncpa [#allocation4 + $0x1], 1 }

</bundles_post_ra>
